<compile_context>
chip_gen: v7x
topology: tpu7x:2x2x1
jax: 0.10.0
libtpu: 0.0.40
codegen_flags: <defaults>
</compile_context>

<pallas_src>
import jax
import jax.numpy as jnp
from jax.experimental import pallas as pl
from jax.experimental.pallas import tpu as pltpu

LANE = 128      # lane width of a vreg (last dim)
SUBLANE = 8     # sublane count (second-to-last dim)


# ---------------------------------------------------------------------------
# Pallas kernel: one batch tile through all four layers.
# ---------------------------------------------------------------------------
def actor_kernel(x_ref,
                 w1_ref, b1_ref,
                 w2_ref, b2_ref,
                 w3_ref, b3_ref,
                 w4_ref, b4_ref,
                 o_ref):
    # Layer 1: bf16 x @ bf16 W -> f32 acc (MXU), + f32 bias, ReLU (VPU)
    h = jnp.dot(x_ref[...], w1_ref[...],
                preferred_element_type=jnp.float32) + b1_ref[...]
    h = jnp.maximum(h, 0.0)

    # Layer 2
    h = jnp.dot(h.astype(jnp.bfloat16), w2_ref[...],
                preferred_element_type=jnp.float32) + b2_ref[...]
    h = jnp.maximum(h, 0.0)

    # Layer 3
    h = jnp.dot(h.astype(jnp.bfloat16), w3_ref[...],
                preferred_element_type=jnp.float32) + b3_ref[...]
    h = jnp.maximum(h, 0.0)

    # Layer 4 + tanh (tanh lowers to the EUP -> separate bundle slot)
    h = jnp.dot(h.astype(jnp.bfloat16), w4_ref[...],
                preferred_element_type=jnp.float32) + b4_ref[...]
    o_ref[...] = jnp.tanh(h).astype(o_ref.dtype)


# ---------------------------------------------------------------------------
# Wrapper: padding to lane-dense shapes, batch tiling, pallas_call.
# ---------------------------------------------------------------------------
def _round_up(n, m):
    return ((n + m - 1) // m) * m


def _pad2(a, rows, cols):
    return jnp.pad(a, ((0, rows - a.shape[0]), (0, cols - a.shape[1])))


def actor_forward(x, params, *, batch_tile=512):
    """Forward pass of Actor as a single fused Pallas call.

    x: [B, n_input] float32
    params: dict with w1..w4 ([in, out]) and b1..b4 ([out]) float32
            (weights already in [in, out] layout so the kernel does x @ W)
    returns: [B, n_output] float32
    """
    B, n_input = x.shape
    n_hidden = params["w1"].shape[1]
    n_output = params["w4"].shape[1]

    # Lane-dense (multiple-of-128) feature dims.
    in_p = _round_up(n_input, LANE)
    hid_p = _round_up(n_hidden, LANE)
    out_p = _round_up(n_output, LANE)

    # Batch tiling: pad B to a multiple of the sublane count (8), pick a tile
    # (<= batch_tile, multiple of 8), then pad to a whole number of tiles so
    # every grid block is full (no ragged last tile).
    b_pad8 = _round_up(B, SUBLANE)
    tb = min(_round_up(batch_tile, SUBLANE), b_pad8)
    b_pad = _round_up(b_pad8, tb)
    grid = (b_pad // tb,)

    # bf16 MXU inputs; zero-padded so the extra rows/cols contribute nothing
    # (ReLU(0) = 0, and padded weight rows see only zero activations).
    xp = _pad2(x, b_pad, in_p).astype(jnp.bfloat16)
    w1 = _pad2(params["w1"], in_p, hid_p).astype(jnp.bfloat16)
    w2 = _pad2(params["w2"], hid_p, hid_p).astype(jnp.bfloat16)
    w3 = _pad2(params["w3"], hid_p, hid_p).astype(jnp.bfloat16)
    w4 = _pad2(params["w4"], hid_p, out_p).astype(jnp.bfloat16)
    b1 = _pad2(params["b1"].reshape(1, -1), 1, hid_p).astype(jnp.float32)
    b2 = _pad2(params["b2"].reshape(1, -1), 1, hid_p).astype(jnp.float32)
    b3 = _pad2(params["b3"].reshape(1, -1), 1, hid_p).astype(jnp.float32)
    b4 = _pad2(params["b4"].reshape(1, -1), 1, out_p).astype(jnp.float32)

    # x / out move with the batch grid index; weights & biases stay at block
    # (0, 0) every step -> VMEM-resident, not re-DMA'd.
    x_spec = pl.BlockSpec((tb, in_p), lambda i: (i, 0))
    out_spec = pl.BlockSpec((tb, out_p), lambda i: (i, 0))
    resident = lambda a: pl.BlockSpec(a.shape, lambda i: (0, 0))

    out_padded = pl.pallas_call(
        actor_kernel,
        out_shape=jax.ShapeDtypeStruct((b_pad, out_p), jnp.float32),
        grid=grid,
        in_specs=[x_spec,
                  resident(w1), resident(b1),
                  resident(w2), resident(b2),
                  resident(w3), resident(b3),
                  resident(w4), resident(b4)],
        out_specs=out_spec,
        compiler_params=pltpu.CompilerParams(
            dimension_semantics=("parallel",)),
    )(xp, w1, b1, w2, b2, w3, b3, w4, b4)

    return out_padded[:B, :n_output]


# ---------------------------------------------------------------------------
# Deterministic parameter init (Xavier-uniform weights, zero biases),
# matching PyTorch's nn.init.xavier_uniform_(gain=1) + constant_(bias, 0).
# ---------------------------------------------------------------------------
def xavier_uniform(key, fan_in, fan_out):
    limit = jnp.sqrt(6.0 / (fan_in + fan_out))
    # [in, out] layout (transpose of torch's [out, in]) so the kernel does x @ W.
    return jax.random.uniform(key, (fan_in, fan_out), jnp.float32, -limit, limit)


def init_actor_params(key, n_input, n_output, n_hidden):
    k1, k2, k3, k4 = jax.random.split(key, 4)
    return {
        "w1": xavier_uniform(k1, n_input, n_hidden),
        "b1": jnp.zeros((n_hidden,), jnp.float32),
        "w2": xavier_uniform(k2, n_hidden, n_hidden),
        "b2": jnp.zeros((n_hidden,), jnp.float32),
        "w3": xavier_uniform(k3, n_hidden, n_hidden),
        "b3": jnp.zeros((n_hidden,), jnp.float32),
        "w4": xavier_uniform(k4, n_hidden, n_output),
        "b4": jnp.zeros((n_output,), jnp.float32),
    }


def actor_reference(x, params):
    """Pure-JAX f32 reference for the correctness check."""
    h = jnp.maximum(x @ params["w1"] + params["b1"], 0.0)
    h = jnp.maximum(h @ params["w2"] + params["b2"], 0.0)
    h = jnp.maximum(h @ params["w3"] + params["b3"], 0.0)
    return jnp.tanh(h @ params["w4"] + params["b4"])


if __name__ == "__main__":
    key = jax.random.PRNGKey(0)
    k_params, k_x1, k_x2 = jax.random.split(key, 3)

    batch, n_input, n_hidden, n_output = 8, 16, 32, 4
    params = init_actor_params(k_params, n_input, n_output, n_hidden)

    # Small batch (single grid step).
    x_small = jax.random.normal(k_x1, (batch, n_input), jnp.float32)
    out_small = jax.block_until_ready(actor_forward(x_small, params))
    ref_small = actor_reference(x_small, params)
    assert out_small.shape == (batch, n_output), out_small.shape
    # bf16 MXU inputs -> tolerance loosened vs the f32 reference.
    assert jnp.allclose(out_small, ref_small, atol=5e-2, rtol=5e-2), (
        "small-batch mismatch vs reference: max abs err = "
        f"{float(jnp.max(jnp.abs(out_small - ref_small)))}")

    # Larger, ragged batch (exercises multi-step grid + padding + slicing),
    # with a smaller batch_tile so the grid really has several steps.
    big_batch = 300
    x_big = jax.random.normal(k_x2, (big_batch, n_input), jnp.float32)
    out_big = jax.block_until_ready(actor_forward(x_big, params, batch_tile=128))
    ref_big = actor_reference(x_big, params)
    assert out_big.shape == (big_batch, n_output), out_big.shape
    assert jnp.allclose(out_big, ref_big, atol=5e-2, rtol=5e-2), (
        "large-batch mismatch vs reference: max abs err = "
        f"{float(jnp.max(jnp.abs(out_big - ref_big)))}")

    print("KERNEL_OK")
</pallas_src>

<mosaic_0001>
module attributes {stable_mosaic.version = 11 : i64} {
  func.func @actor_kernel(%arg0: i32, %arg1: memref<8x128xbf16, #tpu.memory_space<vmem>>, %arg2: memref<128x128xbf16, #tpu.memory_space<vmem>>, %arg3: memref<1x128xf32, #tpu.memory_space<vmem>>, %arg4: memref<128x128xbf16, #tpu.memory_space<vmem>>, %arg5: memref<1x128xf32, #tpu.memory_space<vmem>>, %arg6: memref<128x128xbf16, #tpu.memory_space<vmem>>, %arg7: memref<1x128xf32, #tpu.memory_space<vmem>>, %arg8: memref<128x128xbf16, #tpu.memory_space<vmem>>, %arg9: memref<1x128xf32, #tpu.memory_space<vmem>>, %arg10: memref<8x128xf32, #tpu.memory_space<vmem>>) attributes {dimension_semantics = [#tpu.dimension_semantics<parallel>], iteration_bounds = array<i64: 1>, scalar_prefetch = 0 : i64, scratch_operands = 0 : i64, tpu.core_type = #tpu.core_type<tc>, window_params = [{transform_indices = @transform_0, window_bounds = array<i64: 8, 128>}, {pipeline_mode = #tpu.pipeline_mode<synchronous>, transform_indices = @transform_1, window_bounds = array<i64: 128, 128>}, {pipeline_mode = #tpu.pipeline_mode<synchronous>, transform_indices = @transform_2, window_bounds = array<i64: 1, 128>}, {pipeline_mode = #tpu.pipeline_mode<synchronous>, transform_indices = @transform_3, window_bounds = array<i64: 128, 128>}, {pipeline_mode = #tpu.pipeline_mode<synchronous>, transform_indices = @transform_4, window_bounds = array<i64: 1, 128>}, {pipeline_mode = #tpu.pipeline_mode<synchronous>, transform_indices = @transform_5, window_bounds = array<i64: 128, 128>}, {pipeline_mode = #tpu.pipeline_mode<synchronous>, transform_indices = @transform_6, window_bounds = array<i64: 1, 128>}, {pipeline_mode = #tpu.pipeline_mode<synchronous>, transform_indices = @transform_7, window_bounds = array<i64: 128, 128>}, {pipeline_mode = #tpu.pipeline_mode<synchronous>, transform_indices = @transform_8, window_bounds = array<i64: 1, 128>}, {transform_indices = @transform_9, window_bounds = array<i64: 8, 128>}]} {
    %c0 = arith.constant 0 : index
    %c0_0 = arith.constant 0 : index
    %0 = vector.load %arg1[%c0, %c0_0] : memref<8x128xbf16, #tpu.memory_space<vmem>>, vector<8x128xbf16>
    %c0_1 = arith.constant 0 : index
    %c0_2 = arith.constant 0 : index
    %1 = vector.load %arg2[%c0_1, %c0_2] : memref<128x128xbf16, #tpu.memory_space<vmem>>, vector<128x128xbf16>
    %cst = arith.constant dense<0.000000e+00> : vector<8x128xf32>
    %2 = tpu.matmul %0, %1, %cst {dimension_numbers = #tpu.dot_dimension_numbers<[1], [0], [0], [1], [0, 0, 1, 1], [], []>} : vector<8x128xbf16>, vector<128x128xbf16>, vector<8x128xf32> -> vector<8x128xf32>
    %c0_3 = arith.constant 0 : index
    %c0_4 = arith.constant 0 : index
    %3 = vector.load %arg3[%c0_3, %c0_4] : memref<1x128xf32, #tpu.memory_space<vmem>>, vector<1x128xf32>
    %4 = vector.broadcast %3 : vector<1x128xf32> to vector<8x128xf32>
    %5 = arith.addf %2, %4 : vector<8x128xf32>
    %cst_5 = arith.constant 0.000000e+00 : f32
    %6 = vector.broadcast %cst_5 : f32 to vector<8x128xf32>
    %7 = arith.maximumf %5, %6 : vector<8x128xf32>
    %8 = arith.truncf %7 : vector<8x128xf32> to vector<8x128xbf16>
    %c0_6 = arith.constant 0 : index
    %c0_7 = arith.constant 0 : index
    %9 = vector.load %arg4[%c0_6, %c0_7] : memref<128x128xbf16, #tpu.memory_space<vmem>>, vector<128x128xbf16>
    %cst_8 = arith.constant dense<0.000000e+00> : vector<8x128xf32>
    %10 = tpu.matmul %8, %9, %cst_8 {dimension_numbers = #tpu.dot_dimension_numbers<[1], [0], [0], [1], [0, 0, 1, 1], [], []>} : vector<8x128xbf16>, vector<128x128xbf16>, vector<8x128xf32> -> vector<8x128xf32>
    %c0_9 = arith.constant 0 : index
    %c0_10 = arith.constant 0 : index
    %11 = vector.load %arg5[%c0_9, %c0_10] : memref<1x128xf32, #tpu.memory_space<vmem>>, vector<1x128xf32>
    %12 = vector.broadcast %11 : vector<1x128xf32> to vector<8x128xf32>
    %13 = arith.addf %10, %12 : vector<8x128xf32>
    %cst_11 = arith.constant 0.000000e+00 : f32
    %14 = vector.broadcast %cst_11 : f32 to vector<8x128xf32>
    %15 = arith.maximumf %13, %14 : vector<8x128xf32>
    %16 = arith.truncf %15 : vector<8x128xf32> to vector<8x128xbf16>
    %c0_12 = arith.constant 0 : index
    %c0_13 = arith.constant 0 : index
    %17 = vector.load %arg6[%c0_12, %c0_13] : memref<128x128xbf16, #tpu.memory_space<vmem>>, vector<128x128xbf16>
    %cst_14 = arith.constant dense<0.000000e+00> : vector<8x128xf32>
    %18 = tpu.matmul %16, %17, %cst_14 {dimension_numbers = #tpu.dot_dimension_numbers<[1], [0], [0], [1], [0, 0, 1, 1], [], []>} : vector<8x128xbf16>, vector<128x128xbf16>, vector<8x128xf32> -> vector<8x128xf32>
    %c0_15 = arith.constant 0 : index
    %c0_16 = arith.constant 0 : index
    %19 = vector.load %arg7[%c0_15, %c0_16] : memref<1x128xf32, #tpu.memory_space<vmem>>, vector<1x128xf32>
    %20 = vector.broadcast %19 : vector<1x128xf32> to vector<8x128xf32>
    %21 = arith.addf %18, %20 : vector<8x128xf32>
    %cst_17 = arith.constant 0.000000e+00 : f32
    %22 = vector.broadcast %cst_17 : f32 to vector<8x128xf32>
    %23 = arith.maximumf %21, %22 : vector<8x128xf32>
    %24 = arith.truncf %23 : vector<8x128xf32> to vector<8x128xbf16>
    %c0_18 = arith.constant 0 : index
    %c0_19 = arith.constant 0 : index
    %25 = vector.load %arg8[%c0_18, %c0_19] : memref<128x128xbf16, #tpu.memory_space<vmem>>, vector<128x128xbf16>
    %cst_20 = arith.constant dense<0.000000e+00> : vector<8x128xf32>
    %26 = tpu.matmul %24, %25, %cst_20 {dimension_numbers = #tpu.dot_dimension_numbers<[1], [0], [0], [1], [0, 0, 1, 1], [], []>} : vector<8x128xbf16>, vector<128x128xbf16>, vector<8x128xf32> -> vector<8x128xf32>
    %c0_21 = arith.constant 0 : index
    %c0_22 = arith.constant 0 : index
    %27 = vector.load %arg9[%c0_21, %c0_22] : memref<1x128xf32, #tpu.memory_space<vmem>>, vector<1x128xf32>
    %28 = vector.broadcast %27 : vector<1x128xf32> to vector<8x128xf32>
    %29 = arith.addf %26, %28 : vector<8x128xf32>
    %30 = math.tanh %29 : vector<8x128xf32>
    %c0_23 = arith.constant 0 : index
    %c0_24 = arith.constant 0 : index
    %31 = vector.load %arg10[%c0_23, %c0_24] : memref<8x128xf32, #tpu.memory_space<vmem>>, vector<8x128xf32>
    tpu.vector_store %arg10[%c0_23, %c0_24], %30 {strides = array<i32>} : memref<8x128xf32, #tpu.memory_space<vmem>>, vector<8x128xf32>,
    return
  }
  func.func @transform_0(%arg0: i32) -> (i32, i32) {
    %c0_i32 = arith.constant 0 : i32
    %c0_i32_0 = arith.constant 0 : i32
    return %arg0, %c0_i32 : i32, i32
  }
  func.func @transform_1(%arg0: i32) -> (i32, i32) {
    %c0_i32 = arith.constant 0 : i32
    %c0_i32_0 = arith.constant 0 : i32
    %c0_i32_1 = arith.constant 0 : i32
    return %c0_i32, %c0_i32_0 : i32, i32
  }
  func.func @transform_2(%arg0: i32) -> (i32, i32) {
    %c0_i32 = arith.constant 0 : i32
    %c0_i32_0 = arith.constant 0 : i32
    %c0_i32_1 = arith.constant 0 : i32
    return %c0_i32, %c0_i32_0 : i32, i32
  }
  func.func @transform_3(%arg0: i32) -> (i32, i32) {
    %c0_i32 = arith.constant 0 : i32
    %c0_i32_0 = arith.constant 0 : i32
    %c0_i32_1 = arith.constant 0 : i32
    return %c0_i32, %c0_i32_0 : i32, i32
  }
  func.func @transform_4(%arg0: i32) -> (i32, i32) {
    %c0_i32 = arith.constant 0 : i32
    %c0_i32_0 = arith.constant 0 : i32
    %c0_i32_1 = arith.constant 0 : i32
    return %c0_i32, %c0_i32_0 : i32, i32
  }
  func.func @transform_5(%arg0: i32) -> (i32, i32) {
    %c0_i32 = arith.constant 0 : i32
    %c0_i32_0 = arith.constant 0 : i32
    %c0_i32_1 = arith.constant 0 : i32
    return %c0_i32, %c0_i32_0 : i32, i32
  }
  func.func @transform_6(%arg0: i32) -> (i32, i32) {
    %c0_i32 = arith.constant 0 : i32
    %c0_i32_0 = arith.constant 0 : i32
    %c0_i32_1 = arith.constant 0 : i32
    return %c0_i32, %c0_i32_0 : i32, i32
  }
  func.func @transform_7(%arg0: i32) -> (i32, i32) {
    %c0_i32 = arith.constant 0 : i32
    %c0_i32_0 = arith.constant 0 : i32
    %c0_i32_1 = arith.constant 0 : i32
    return %c0_i32, %c0_i32_0 : i32, i32
  }
  func.func @transform_8(%arg0: i32) -> (i32, i32) {
    %c0_i32 = arith.constant 0 : i32
    %c0_i32_0 = arith.constant 0 : i32
    %c0_i32_1 = arith.constant 0 : i32
    return %c0_i32, %c0_i32_0 : i32, i32
  }
  func.func @transform_9(%arg0: i32) -> (i32, i32) {
    %c0_i32 = arith.constant 0 : i32
    %c0_i32_0 = arith.constant 0 : i32
    return %arg0, %c0_i32 : i32, i32
  }
}

</mosaic_0001>

<bundles_post_ra>
// kernel: tpu_custom_call.1
= control target key start
LH: loop header
LB: loop body
LE: loop exit
PB: predicated region body
PF: predicated region fallthrough
CT: control target
= control target key end

     0   :  { %14 = vsyncpa [#allocation3], 0  ;;  %s1102_s0 = inlined_call_operand.hbm [shape: bf16[8,128], index: 0, kind: input, shape index: {}]   ;;  %s1103_s1 = inlined_call_operand.hbm [shape: bf16[128,128], index: 1, kind: input, shape index: {}]   ;;  %s1104_s2 = inlined_call_operand.vmem [shape: f32[1,128], index: 2, kind: input, shape index: {}]   ;;  %s1105_s3 = inlined_call_operand.hbm [shape: bf16[128,128], index: 3, kind: input, shape index: {}]   ;;  %s1106_s4 = inlined_call_operand.vmem [shape: f32[1,128], index: 4, kind: input, shape index: {}]   ;;  %s1107_s5 = inlined_call_operand.hbm [shape: bf16[128,128], index: 5, kind: input, shape index: {}]   ;;  %s1108_s6 = inlined_call_operand.vmem [shape: f32[1,128], index: 6, kind: input, shape index: {}]   ;;  %s1109_s7 = inlined_call_operand.hbm [shape: bf16[128,128], index: 7, kind: input, shape index: {}]   ;;  %s1110_s8 = inlined_call_operand.vmem [shape: f32[1,128], index: 8, kind: input, shape index: {}]   ;;  %s1111_s9 = inlined_call_operand.hbm [shape: f32[8,128], index: 9, kind: output, shape index: {}]  }
   0x1   :  { %15 = vsyncpa [#allocation6], 0 }
   0x2   :  { %16 = vsyncpa [#allocation9], 0 }
   0x3   :  { %17 = vsyncpa [#allocation4], 0  ;;  %s906_s30 = smov [#allocation5]   ;;  %s766_s13 = scalar_lea.hbm %s1103_s1, 1024 }
   0x4   :  { %s33_s10 = sshll.u32 %s906_s30, 4  ;;  %p767_p0 = scmp.ne.s32.totalorder %s1103_s1, %s766_s13  ;;  %s34_s10 = int_to_ptr.vmem [resolvable:$true] %s33_s10 }
   0x5   :  { %p770_p1 = scmp.lt.u32.totalorder %s766_s13, %s1103_s1 }
   0x7   :  { %p772_p2 = pnand %p770_p1, %p767_p0 }
   0x9   :  { %775 = shalt.err (!%p772_p2)
}
   0xa   :  { %s776_s18 = scalar_lea.vmem %s34_s10, 1024  ;;  %p781_p4 = scmp.lt.s32.totalorder %s34_s10, %s34_s10 }
   0xb   :  { %p777_p3 = scmp.ne.s32.totalorder %s34_s10, %s776_s18  ;;  %p782_p5 = scmp.lt.s32.totalorder %s776_s18, %s776_s18 }
   0xd   :  { %p783_p6 = por %p782_p5, %p781_p4 }
   0xf   :  { %p784_p7 = pnand %p783_p6, %p777_p3 }
  0x11   :  { %787 = shalt.err (!%p784_p7)
}
  0x12   :  { %s907_s19 = smov 64   ;;  %s908_s20 = smov 4  }
  0x13   :  { %39 = dma.hbm_to_vmem [thread:$0]  %s1103_s1, 1024, %s34_s10, [#allocation6], %s907_s19, %s907_s19, %s908_s20  }
  0x14   :  { %s909_s23 = smov [#allocation8]   ;;  %s910_s25 = smov [#allocation2]  }
  0x15   :  { %s61_s24 = sshll.u32 %s909_s23, 4  ;;  %s24_s26 = sshll.u32 %s910_s25, 4  ;;  %s62_s24 = int_to_ptr.vmem [resolvable:$true] %s61_s24  ;;  %s25_s26 = int_to_ptr.vmem [resolvable:$true] %s24_s26 }
  0x16   :  { %s788_s29 = scalar_lea.hbm %s1107_s5, 1024 }
  0x17   :  { %p789_p8 = scmp.ne.s32.totalorder %s1107_s5, %s788_s29  ;;  %p792_p9 = scmp.lt.u32.totalorder %s788_s29, %s1107_s5 }
  0x19   :  { %p794_p10 = pnand %p792_p9, %p789_p8 }
  0x1b   :  { %797 = shalt.err (!%p794_p10)
}
  0x1c   :  { %s798_s1 = scalar_lea.vmem %s62_s24, 1024  ;;  %p803_p12 = scmp.lt.s32.totalorder %s62_s24, %s62_s24 }
  0x1d   :  { %p799_p11 = scmp.ne.s32.totalorder %s62_s24, %s798_s1  ;;  %p804_p13 = scmp.lt.s32.totalorder %s798_s1, %s798_s1 }
  0x1f   :  { %p805_p0 = por %p804_p13, %p803_p12 }
  0x21   :  { %p806_p1 = pnand %p805_p0, %p799_p11 }
  0x23   :  { %809 = shalt.err (!%p806_p1)
}
  0x24   :  { %67 = dma.hbm_to_vmem [thread:$0]  %s1107_s5, 1024, %s62_s24, [#allocation9], %s907_s19, %s907_s19, %s908_s20  }
  0x25   :  { %s810_s17 = scalar_lea.hbm %s1102_s0, 64 }
  0x26   :  { %p811_p2 = scmp.ne.s32.totalorder %s1102_s0, %s810_s17  ;;  %p814_p3 = scmp.lt.u32.totalorder %s810_s17, %s1102_s0 }
  0x28   :  { %p816_p4 = pnand %p814_p3, %p811_p2 }
  0x2a   :  { %819 = shalt.err (!%p816_p4)
}
  0x2b   :  { %s820_s25 = scalar_lea.vmem %s25_s26, 64  ;;  %p825_p6 = scmp.lt.s32.totalorder %s25_s26, %s25_s26 }
  0x2c   :  { %p821_p5 = scmp.ne.s32.totalorder %s25_s26, %s820_s25  ;;  %p826_p7 = scmp.lt.s32.totalorder %s820_s25, %s820_s25 }
  0x2e   :  { %p827_p8 = por %p826_p7, %p825_p6 }
  0x30   :  { %p828_p9 = pnand %p827_p8, %p821_p5 }
  0x32   :  { %831 = shalt.err (!%p828_p9)
}
  0x33   :  { %27 = dma.hbm_to_vmem [thread:$0]  %s1102_s0, 64, %s25_s26, [#allocation3]  }
  0x34   :  { %s911_s27 = smov [#allocation7]   ;;  %s912_s29 = smov [#allocation10]  }
  0x35   :  { %s47_s28 = sshll.u32 %s911_s27, 4  ;;  %s75_s30 = sshll.u32 %s912_s29, 4  ;;  %s48_s28 = int_to_ptr.vmem [resolvable:$true] %s47_s28  ;;  %s76_s30 = int_to_ptr.vmem [resolvable:$true] %s75_s30 }
  0x36   :  { %s832_s13 = scalar_lea.hbm %s1105_s3, 1024 }
  0x37   :  { %p833_p10 = scmp.ne.s32.totalorder %s1105_s3, %s832_s13  ;;  %p836_p11 = scmp.lt.u32.totalorder %s832_s13, %s1105_s3 }
  0x39   :  { %p838_p12 = pnand %p836_p11, %p833_p10 }
  0x3b   :  { %841 = shalt.err (!%p838_p12)
}
  0x3c   :  { %s842_s0 = scalar_lea.vmem %s48_s28, 1024  ;;  %p847_p0 = scmp.lt.s32.totalorder %s48_s28, %s48_s28 }
  0x3d   :  { %p843_p13 = scmp.ne.s32.totalorder %s48_s28, %s842_s0  ;;  %p848_p1 = scmp.lt.s32.totalorder %s842_s0, %s842_s0 }
  0x3f   :  { %p849_p2 = por %p848_p1, %p847_p0 }
  0x41   :  { %p850_p3 = pnand %p849_p2, %p843_p13 }
  0x43   :  { %853 = shalt.err (!%p850_p3)
}
  0x44   :  { %53 = dma.hbm_to_vmem [thread:$0]  %s1105_s3, 1024, %s48_s28, [#allocation6], %s907_s19, %s907_s19, %s908_s20  }
  0x45   :  { %s854_s21 = scalar_lea.hbm %s1109_s7, 1024 }
  0x46   :  { %p855_p4 = scmp.ne.s32.totalorder %s1109_s7, %s854_s21  ;;  %p858_p5 = scmp.lt.u32.totalorder %s854_s21, %s1109_s7 }
  0x48   :  { %p860_p6 = pnand %p858_p5, %p855_p4 }
  0x4a   :  { %863 = shalt.err (!%p860_p6)
}
  0x4b   :  { %s864_s24 = scalar_lea.vmem %s76_s30, 1024  ;;  %p869_p8 = scmp.lt.s32.totalorder %s76_s30, %s76_s30 }
  0x4c   :  { %p865_p7 = scmp.ne.s32.totalorder %s76_s30, %s864_s24  ;;  %p870_p9 = scmp.lt.s32.totalorder %s864_s24, %s864_s24 }
  0x4e   :  { %p871_p10 = por %p870_p9, %p869_p8 }
  0x50   :  { %p872_p11 = pnand %p871_p10, %p865_p7 }
  0x52   :  { %875 = shalt.err (!%p872_p11)
}
  0x53   :  { %81 = dma.hbm_to_vmem [thread:$0]  %s1109_s7, 1024, %s76_s30, [#allocation9], %s907_s19, %s907_s19, %s908_s20  }
  0x54   :  { %898 = dma.done.wait [#allocation3], 64  }
  0x55   :  { %899 = vsyncadd [#allocation3], 4294967232 }
  0x56   :  { %900 = dma.done.wait [#allocation6], 2048  }
  0x57   :  { %901 = vsyncadd [#allocation6], 4294965248 }
  0x58   :  { %902 = dma.done.wait [#allocation9], 2048  }
  0x59   :  { %903 = vsyncadd [#allocation9], 4294965248  ;;  %v913_v0 = vmov 0.0   ;;  %vm914_vm0 = vmmov 0   ;;  %v732_v1 = vld [vmem:[#allocation5] sm:$0xff]   ;;  %v733_v2 = vld [vmem:[#allocation5 + $0x8] sm:$0xff]  }
  0x5a   :  { %642 = vmatprep.subr.bf16.mxu0 %v913_v0  ;;  %658 = vmatprep.mubr.msk.bf16.mxu0 %vm914_vm0, %v913_v0  ;;  %v734_v3 = vld [vmem:[#allocation5 + $0x10] sm:$0xff]   ;;  %v740_v4 = vld [vmem:[#allocation7] sm:$0xff]   ;;  %v735_v5 = vld [vmem:[#allocation5 + $0x18] sm:$0xff]   ;;  %s915_s11 = smov [#allocation11]  }
  0x5b   :  { %662 = vmatprep.subr.bf16.mxu1 %v913_v0  ;;  %678 = vmatprep.mubr.msk.bf16.mxu1 %vm914_vm0, %v913_v0  ;;  %v741_v6 = vld [vmem:[#allocation7 + $0x8] sm:$0xff]   ;;  %v736_v7 = vld [vmem:[#allocation5 + $0x20] sm:$0xff]   ;;  %v742_v8 = vld [vmem:[#allocation7 + $0x10] sm:$0xff]  }
  0x5c   :  { %643 = vmatpush3.bf16.msra.mxu0 %v732_v1  ;;  %663 = vmatpush3.bf16.msra.mxu1 %v740_v4  ;;  %v737_v9 = vld [vmem:[#allocation5 + $0x28] sm:$0xff]   ;;  %v743_v10 = vld [vmem:[#allocation7 + $0x18] sm:$0xff]   ;;  %v738_v11 = vld [vmem:[#allocation5 + $0x30] sm:$0xff]  }
  0x5d   :  { %644 = vmatprep.subr.bf16.mxu0 %v913_v0  ;;  %664 = vmatprep.subr.bf16.mxu1 %v913_v0  ;;  %v744_v12 = vld [vmem:[#allocation7 + $0x20] sm:$0xff]   ;;  %v739_v13 = vld [vmem:[#allocation5 + $0x38] sm:$0xff]   ;;  %v745_v14 = vld [vmem:[#allocation7 + $0x28] sm:$0xff]  }
  0x5e   :  { %v100_v15 = vld [vmem:[#allocation2] sm:$0xf]  ;;  %v746_v16 = vld [vmem:[#allocation7 + $0x30] sm:$0xff]   ;;  %v748_v18 = vld [vmem:[#allocation8] sm:$0xff]  }
  0x5f   :  { %v747_v17 = vld [vmem:[#allocation7 + $0x38] sm:$0xff]   ;;  %v749_v19 = vld [vmem:[#allocation8 + $0x8] sm:$0xff]   ;;  %v750_v20 = vld [vmem:[#allocation8 + $0x10] sm:$0xff]  }
  0x60   :  { %645 = vmatpush3.bf16.msra.mxu0 %v733_v2  ;;  %665 = vmatpush3.bf16.msra.mxu1 %v741_v6  ;;  %v751_v21 = vld [vmem:[#allocation8 + $0x18] sm:$0xff]   ;;  %v752_v22 = vld [vmem:[#allocation8 + $0x20] sm:$0xff]   ;;  %v753_v23 = vld [vmem:[#allocation8 + $0x28] sm:$0xff]  }
  0x61   :  { %646 = vmatprep.subr.bf16.mxu0 %v913_v0  ;;  %666 = vmatprep.subr.bf16.mxu1 %v913_v0  ;;  %v570_v24 = vld [vmem:[%s1104_s2] ss:$0 sm:$0xff]  ;;  %v754_v32 = vld [vmem:[#allocation8 + $0x30] sm:$0xff]   ;;  %v756_v34 = vld [vmem:[#allocation10] sm:$0xff]  }
  0x62   :  { %v755_v33 = vld [vmem:[#allocation8 + $0x38] sm:$0xff]   ;;  %v757_v35 = vld [vmem:[#allocation10 + $0x8] sm:$0xff]   ;;  %v758_v36 = vld [vmem:[#allocation10 + $0x10] sm:$0xff]  }
  0x63   :  { %v759_v37 = vld [vmem:[#allocation10 + $0x18] sm:$0xff]   ;;  %v760_v38 = vld [vmem:[#allocation10 + $0x20] sm:$0xff]   ;;  %v761_v39 = vld [vmem:[#allocation10 + $0x28] sm:$0xff]  }
  0x64   :  { %647 = vmatpush3.bf16.msra.mxu0 %v734_v3  ;;  %667 = vmatpush3.bf16.msra.mxu1 %v742_v8  ;;  %v579_v40 = vld [vmem:[%s1106_s4] ss:$0 sm:$0xff]  ;;  %v762_v48 = vld [vmem:[#allocation10 + $0x30] sm:$0xff]  }
  0x65   :  { %648 = vmatprep.subr.bf16.mxu0 %v913_v0  ;;  %668 = vmatprep.subr.bf16.mxu1 %v913_v0  ;;  %v763_v49 = vld [vmem:[#allocation10 + $0x38] sm:$0xff]  }
  0x66   :  { %v588_v50 = vld [vmem:[%s1108_s6] ss:$0 sm:$0xff]  ;;  %s559_s6 = sshll.u32 %s915_s11, 4  ;;  %s560_s6 = int_to_ptr.vmem [resolvable:$true] %s559_s6 }
  0x67   :  { %v597_v58 = vld [vmem:[%s1110_s8] ss:$0 sm:$0xff]  ;;  %s876_s12 = scalar_lea.vmem %s560_s6, 128  ;;  %p881_p13 = scmp.lt.s32.totalorder %s560_s6, %s560_s6 }
  0x68   :  { %649 = vmatpush3.bf16.msra.mxu0 %v735_v5  ;;  %669 = vmatpush3.bf16.msra.mxu1 %v743_v10  ;;  %p877_p12 = scmp.ne.s32.totalorder %s560_s6, %s876_s12  ;;  %p882_p0 = scmp.lt.s32.totalorder %s876_s12, %s876_s12 }
  0x69   :  { %650 = vmatprep.subr.bf16.mxu0 %v913_v0  ;;  %670 = vmatprep.subr.bf16.mxu1 %v913_v0 }
  0x6a   :  { %p883_p1 = por %p882_p0, %p881_p13 }
  0x6c   :  { %651 = vmatpush3.bf16.msra.mxu0 %v736_v7  ;;  %671 = vmatpush3.bf16.msra.mxu1 %v744_v12  ;;  %p884_p2 = pnand %p883_p1, %p877_p12 }
  0x6d   :  { %652 = vmatprep.subr.bf16.mxu0 %v913_v0  ;;  %672 = vmatprep.subr.bf16.mxu1 %v913_v0 }
  0x70   :  { %653 = vmatpush3.bf16.msra.mxu0 %v737_v9  ;;  %673 = vmatpush3.bf16.msra.mxu1 %v745_v14 }
  0x71   :  { %654 = vmatprep.subr.bf16.mxu0 %v913_v0  ;;  %674 = vmatprep.subr.bf16.mxu1 %v913_v0 }
  0x74   :  { %655 = vmatpush3.bf16.msra.mxu0 %v738_v11  ;;  %675 = vmatpush3.bf16.msra.mxu1 %v746_v16 }
  0x75   :  { %656 = vmatprep.subr.bf16.mxu0 %v913_v0  ;;  %676 = vmatprep.subr.bf16.mxu1 %v913_v0 }
  0x78   :  { %657 = vmatpush3.bf16.msra.mxu0 %v739_v13  ;;  %677 = vmatpush3.bf16.msra.mxu1 %v747_v17 }
  0x79   :  { %682 = vmatprep.subr.bf16.mxu0 %v913_v0  ;;  %702 = vmatprep.subr.bf16.mxu1 %v913_v0 }
  0x7b   :  { %659 = vmatmul.mubr.bf16.vlgmr.msra.gmra.mrb[0].mxu0 %v100_v15 }
  0x7c   :  { %698 = vmatprep.mubr.msk.bf16.mxu0 %vm914_vm0, %v913_v0  ;;  %683 = vmatpush3.bf16.msra.mxu0 %v748_v18 }
  0x7d   :  { %684 = vmatprep.subr.bf16.mxu0 %v913_v0 }
  0x80   :  { %685 = vmatpush3.bf16.msra.mxu0 %v749_v19 }
  0x81   :  { %686 = vmatprep.subr.bf16.mxu0 %v913_v0 }
  0x84   :  { %687 = vmatpush3.bf16.msra.mxu0 %v750_v20 }
  0x85   :  { %688 = vmatprep.subr.bf16.mxu0 %v913_v0 }
  0x88   :  { %689 = vmatpush3.bf16.msra.mxu0 %v751_v21 }
  0x89   :  { %690 = vmatprep.subr.bf16.mxu0 %v913_v0 }
  0x8c   :  { %691 = vmatpush3.bf16.msra.mxu0 %v752_v22 }
  0x8d   :  { %692 = vmatprep.subr.bf16.mxu0 %v913_v0 }
  0x90   :  { %693 = vmatpush3.bf16.msra.mxu0 %v753_v23 }
  0x91   :  { %694 = vmatprep.subr.bf16.mxu0 %v913_v0 }
  0x94   :  { %695 = vmatpush3.bf16.msra.mxu0 %v754_v32 }
  0x95   :  { %696 = vmatprep.subr.bf16.mxu0 %v913_v0 }
  0x98   :  { %697 = vmatpush3.bf16.msra.mxu0 %v755_v33 }
 0x14e   :  { %v206_v25 = vpop.f32.mrb[0].mxu0 }
 0x14f   :  { %v207_v26 = vadd.f32 %v570_v24, %v206_v25  ;;  %v660_v27 = vpop.f32.mrb[1].mxu0 }
 0x150   :  { %v209_v28 = vpop.f32.mrb[2].mxu0 }
 0x151   :  { %v212_v29 = vmax.f32 %v207_v26, 0.0  ;;  %v661_v30 = vpop.f32.mrb[3].mxu0 }
 0x153   :  { %v213_v31 = vpack.c.bf16 %v212_v29, %v212_v29 }
 0x155   :  { %679 = vmatmul.mubr.bf16.vlgmr.msra.gmra.mrb[0].mxu1 %v213_v31 }
 0x156   :  { %718 = vmatprep.mubr.msk.bf16.mxu1 %vm914_vm0, %v913_v0  ;;  %703 = vmatpush3.bf16.msra.mxu1 %v756_v34 }
 0x157   :  { %704 = vmatprep.subr.bf16.mxu1 %v913_v0 }
 0x15a   :  { %705 = vmatpush3.bf16.msra.mxu1 %v757_v35 }
 0x15b   :  { %706 = vmatprep.subr.bf16.mxu1 %v913_v0 }
 0x15e   :  { %707 = vmatpush3.bf16.msra.mxu1 %v758_v36 }
 0x15f   :  { %708 = vmatprep.subr.bf16.mxu1 %v913_v0 }
 0x162   :  { %709 = vmatpush3.bf16.msra.mxu1 %v759_v37 }
 0x163   :  { %710 = vmatprep.subr.bf16.mxu1 %v913_v0 }
 0x166   :  { %711 = vmatpush3.bf16.msra.mxu1 %v760_v38 }
 0x167   :  { %712 = vmatprep.subr.bf16.mxu1 %v913_v0 }
 0x16a   :  { %713 = vmatpush3.bf16.msra.mxu1 %v761_v39 }
 0x16b   :  { %714 = vmatprep.subr.bf16.mxu1 %v913_v0 }
 0x16e   :  { %715 = vmatpush3.bf16.msra.mxu1 %v762_v48 }
 0x16f   :  { %716 = vmatprep.subr.bf16.mxu1 %v913_v0 }
 0x172   :  { %717 = vmatpush3.bf16.msra.mxu1 %v763_v49 }
 0x228   :  { %v319_v41 = vpop.f32.mrb[0].mxu1 }
 0x229   :  { %v320_v42 = vadd.f32 %v579_v40, %v319_v41  ;;  %v680_v43 = vpop.f32.mrb[1].mxu1 }
 0x22a   :  { %v322_v44 = vpop.f32.mrb[2].mxu1 }
 0x22b   :  { %v325_v45 = vmax.f32 %v320_v42, 0.0  ;;  %v681_v46 = vpop.f32.mrb[3].mxu1 }
 0x22d   :  { %v326_v47 = vpack.c.bf16 %v325_v45, %v325_v45 }
 0x22f   :  { %699 = vmatmul.mubr.bf16.vlgmr.msra.gmra.mrb[4].mxu0 %v326_v47 }
 0x302   :  { %v432_v51 = vpop.f32.mrb[4].mxu0 }
 0x303   :  { %v433_v52 = vadd.f32 %v588_v50, %v432_v51  ;;  %v700_v53 = vpop.f32.mrb[5].mxu0 }
 0x304   :  { %v435_v54 = vpop.f32.mrb[6].mxu0 }
 0x305   :  { %v438_v55 = vmax.f32 %v433_v52, 0.0  ;;  %v701_v56 = vpop.f32.mrb[7].mxu0 }
 0x307   :  { %v439_v57 = vpack.c.bf16 %v438_v55, %v438_v55 }
 0x309   :  { %719 = vmatmul.mubr.bf16.vlgmr.msra.gmra.mrb[4].mxu1 %v439_v57 }
 0x3dc   :  { %v545_v59 = vpop.f32.mrb[4].mxu1 }
 0x3dd   :  { %v546_v60 = vadd.f32 %v597_v58, %v545_v59  ;;  %v720_v61 = vpop.f32.mrb[5].mxu1 }
 0x3de   :  { %v548_v62 = vpop.f32.mrb[6].mxu1 }
 0x3df   :  { %764 = vtanh.f32 %v546_v60  ;;  %v721_v63 = vpop.f32.mrb[7].mxu1 }
 0x3e9   :  { %v765_v0 = vpop.eup %764 }
 0x3ea   :  { %552 = vst [vmem:[#allocation11] sm:$0xff] %v765_v0 }
 0x3eb   :  { %887 = shalt.err (!%p884_p2)
}
 0x3ec   :  { %s888_s1 = scalar_lea.hbm %s1111_s9, 128 }
 0x3ed   :  { %p889_p3 = scmp.ne.s32.totalorder %s1111_s9, %s888_s1  ;;  %p892_p4 = scmp.lt.u32.totalorder %s888_s1, %s1111_s9 }
 0x3ef   :  { %p894_p5 = pnand %p892_p4, %p889_p3 }
 0x3f1   :  { %897 = shalt.err (!%p894_p5)
}
 0x3f2   :  { %562 = dma.vmem_to_hbm [thread:$0]  %s560_s6, 128, %s1111_s9, [#allocation4]  }
 0x3f3   :  { %904 = dma.done.wait [#allocation4], 128  }
 0x3f4   :  { %905 = vsyncadd [#allocation4], 4294967168 }
 0x3f5   :  { %566 = vsyncpa [#allocation3], 1 }
 0x3f6   :  { %567 = vsyncpa [#allocation6], 1 }
 0x3f7   :  { %568 = vsyncpa [#allocation9], 1 }
 0x3f8   :  { %569 = vsyncpa [#allocation4], 1 }

</bundles_post_ra>
